<compile_context>
chip_gen: v6e
topology: v6e:2x2x1
jax: 0.10.0
libtpu: 0.0.40
codegen_flags: <defaults>
</compile_context>

<pallas_src>
import functools
import math

import jax
import jax.numpy as jnp
import numpy as np
from jax.experimental import pallas as pl
from jax.experimental.pallas import tpu as pltpu


# --------------------------------------------------------------------------- #
# Kernel
# --------------------------------------------------------------------------- #
def temporal_attn_kernel(x_ref, wqkv_ref, bqkv_ref, wout_ref, bout_ref,
                         gamma_ref, beta_ref, o_ref,
                         *, num_heads, head_dim, seq_len, eps):
    h, hd, s = num_heads, head_dim, seq_len
    e = h * hd
    bt = x_ref.shape[0]
    m = bt * s

    x = x_ref[...]                                   # (Bt,S,E) or (Bt,S*E), bf16
    xm = x.reshape(m, e)                             # (M, E)

    wqkv = wqkv_ref[...]                             # (E, 3E) bf16, head-major Q|K|V (Q pre-scaled)
    wout = wout_ref[...]                             # (E, E)  bf16
    bqkv = bqkv_ref[...]                             # (1, 3E) f32 (Q part pre-scaled)
    bout = bout_ref[...]                             # (1, E)  f32
    gamma = gamma_ref[...]                           # (1, E)  f32
    beta = beta_ref[...]                             # (1, E)  f32
    mm = wqkv.dtype

    # Fused QKV projection: one MXU matmul with M = Bt*S (bf16 in, f32 acc).
    qkv = jnp.dot(xm, wqkv, preferred_element_type=jnp.float32) + bqkv   # (M, 3E)

    # Stack heads into the batch dim: (H*Bt, S, hd), batch index = (head, batch_elem).
    def stack_heads(base):
        parts = [qkv[:, base + i * hd: base + (i + 1) * hd].reshape(bt, s, hd)
                 for i in range(h)]
        return parts[0] if h == 1 else jnp.concatenate(parts, axis=0)

    q_st = stack_heads(0)
    k_st = stack_heads(e)
    v_st = stack_heads(2 * e)

    # Scores for all (head, batch) pairs in ONE batched NT matmul.
    # 1/sqrt(head_dim) is already folded into the Q weights/bias.
    scores = jax.lax.dot_general(
        q_st.astype(mm), k_st.astype(mm),
        dimension_numbers=(((2,), (2,)), ((0,), (0,))),
        preferred_element_type=jnp.float32)                      # (H*Bt, S, S)

    # Softmax in f32; approx reciprocal goes to the EUP slot.
    scores = scores - jnp.max(scores, axis=-1, keepdims=True)
    p = jnp.exp(scores)
    p = p * pl.reciprocal(jnp.sum(p, axis=-1, keepdims=True), approx=True)

    ao_st = jax.lax.dot_general(
        p.astype(mm), v_st.astype(mm),
        dimension_numbers=(((2,), (1,)), ((0,), (0,))),
        preferred_element_type=jnp.float32)                      # (H*Bt, S, hd)

    # Head-batched output projection (ONE dot_general, K = head_dim per head), then a
    # single vectorized reduction over the head axis.  This drops the zero-init and the
    # per-head accumulator matmuls of the previous version.
    ao_h = ao_st.reshape(h, m, hd)                               # (H, M, hd) -- free regroup
    wout_h = wout.reshape(h, hd, e)                              # (H, hd, E) -- leading split
    proj = jax.lax.dot_general(
        ao_h.astype(mm), wout_h,
        dimension_numbers=(((2,), (1,)), ((0,), (0,))),
        preferred_element_type=jnp.float32)                      # (H, M, E)
    proj = jnp.sum(proj, axis=0) + bout                          # (M, E)

    # Residual + LayerNorm + ELU (all f32 element-wise).
    res = xm.astype(jnp.float32) + proj
    mean = jnp.mean(res, axis=-1, keepdims=True)
    cen = res - mean
    var = jnp.mean(cen * cen, axis=-1, keepdims=True)
    normed = cen * jax.lax.rsqrt(var + eps) * gamma + beta
    out = jnp.where(normed > 0, normed,
                    jnp.exp(jnp.minimum(normed, 0.0)) - 1.0)     # ELU(alpha=1)

    o_ref[...] = out.reshape(o_ref.shape)


# --------------------------------------------------------------------------- #
# Generation-aware policy + block sizing
# --------------------------------------------------------------------------- #
def _device_policy():
    """VMEM limit / grid policy per TPU generation (v7x: 64 MiB VMEM, 2 TCs)."""
    try:
        kind = jax.devices()[0].device_kind.lower()
    except Exception:
        kind = ""
    if "v7" in kind or "7x" in kind:
        return {"two_tc": True, "vmem_limit": 48 * 1024 * 1024,
                "vmem_budget": 40 * 1024 * 1024}
    if "v5" in kind or "v6" in kind:
        return {"two_tc": False, "vmem_limit": 96 * 1024 * 1024,
                "vmem_budget": 80 * 1024 * 1024}
    return {"two_tc": False, "vmem_limit": 64 * 1024 * 1024,
            "vmem_budget": 48 * 1024 * 1024}


def _pick_block_batch(batch, seq_len, embed_dim, num_heads, *, two_tc, vmem_budget):
    """Largest divisor of `batch` whose estimated per-step VMEM live set fits.

    The estimate counts the double-buffered x/out blocks, qkv / residual / LN
    intermediates and the head-batched projection buffer (~(12+H) activation-sized
    f32 buffers) plus the dominant (H*Bt, S, S) score/exp buffers (~3 copies).
    Bigger Bt means bigger M = Bt*S per matmul (MXU wants M >= 256, ideally >= 512);
    single-TC parts (v5e/v6e) therefore take the largest fitting block.  On 2-TC
    parts (v7x) we keep >=2 grid steps so dimension_semantics=('parallel',) can
    shard the grid across both TensorCores.
    """
    def live_bytes(bt):
        act = bt * seq_len * embed_dim * 4
        attn = num_heads * bt * seq_len * seq_len * 4
        w = embed_dim * 3 * embed_dim * 2 + embed_dim * embed_dim * 2 + 8 * embed_dim * 4
        return (12 + num_heads) * act + 3 * attn + w

    divisors = [d for d in range(1, batch + 1) if batch % d == 0]
    fitting = [d for d in divisors if live_bytes(d) <= vmem_budget] or [1]
    bt = max(fitting)
    if two_tc and batch >= 2 and batch // bt < 2:
        two_step = [d for d in fitting if batch // d >= 2]
        if two_step:
            bt = max(two_step)
    return bt


# --------------------------------------------------------------------------- #
# Wrappers
# --------------------------------------------------------------------------- #
def temporal_self_attention_bse(x_bse, kparams, *, num_heads, block_batch=None,
                                eps=1e-5, lane_dense_io=None):
    """x_bse: (batch, seq_len, embed_dim) float32 -> same shape. No HBM transposes."""
    batch, seq_len, embed_dim = x_bse.shape
    head_dim = embed_dim // num_heads
    assert head_dim * num_heads == embed_dim

    policy = _device_policy()
    if block_batch is None:
        block_batch = _pick_block_batch(batch, seq_len, embed_dim, num_heads,
                                        two_tc=policy["two_tc"],
                                        vmem_budget=policy["vmem_budget"])
    assert batch % block_batch == 0
    grid = (batch // block_batch,)

    if lane_dense_io is None:
        # Lane-dense (B, S*E) blocks only pay off when E itself is lane-sparse, and the
        # block's sublane dim (Bt) must obey the (8,128) rule.
        lane_dense_io = (embed_dim % 128 != 0
                         and (seq_len * embed_dim) % 128 == 0
                         and (block_batch % 8 == 0 or block_batch == batch))

    x_in = x_bse.astype(jnp.bfloat16)        # halves x DMA; kernel upcasts for LN/residual
    if lane_dense_io:
        x_in = x_in.reshape(batch, seq_len * embed_dim)          # free HBM reshape
        blk = (block_batch, seq_len * embed_dim)
        idx = lambda b: (b, 0)
        out_struct = jax.ShapeDtypeStruct((batch, seq_len * embed_dim), jnp.float32)
    else:
        blk = (block_batch, seq_len, embed_dim)
        idx = lambda b: (b, 0, 0)
        out_struct = jax.ShapeDtypeStruct((batch, seq_len, embed_dim), jnp.float32)

    def full(shape):
        zeros = (0,) * len(shape)
        return pl.BlockSpec(shape, lambda b: zeros)

    kernel = functools.partial(temporal_attn_kernel, num_heads=num_heads,
                               head_dim=head_dim, seq_len=seq_len, eps=eps)
    e3 = 3 * embed_dim

    out = pl.pallas_call(
        kernel,
        out_shape=out_struct,
        grid_spec=pltpu.PrefetchScalarGridSpec(
            num_scalar_prefetch=0,
            grid=grid,
            in_specs=[
                pl.BlockSpec(blk, idx),                          # x (bf16)
                full((embed_dim, e3)),                           # Wqkv (head-major, Q scaled)
                full((1, e3)),                                   # bqkv
                full((embed_dim, embed_dim)),                    # Wout (transposed)
                full((1, embed_dim)),                            # bout
                full((1, embed_dim)),                            # LN gamma
                full((1, embed_dim)),                            # LN beta
            ],
            out_specs=pl.BlockSpec(blk, idx),
        ),
        compiler_params=pltpu.CompilerParams(
            dimension_semantics=("parallel",),
            vmem_limit_bytes=policy["vmem_limit"]),
    )(x_in, kparams["wqkv"], kparams["bqkv"], kparams["wout"],
      kparams["bout"], kparams["gamma"], kparams["beta"])

    if lane_dense_io:
        out = out.reshape(batch, seq_len, embed_dim)
    return out


def temporal_self_attention(x_sbe, kparams, *, num_heads, block_batch=None,
                            lane_dense_io=None):
    """Compatibility wrapper for the module's (S, B, E) layout.  Prefer calling
    temporal_self_attention_bse directly with (B, S, E) activations so the hot
    path has no wrapper-level HBM transposes."""
    x_bse = jnp.transpose(x_sbe, (1, 0, 2))
    out_bse = temporal_self_attention_bse(x_bse, kparams, num_heads=num_heads,
                                          block_batch=block_batch,
                                          lane_dense_io=lane_dense_io)
    return jnp.transpose(out_bse, (1, 0, 2))


# --------------------------------------------------------------------------- #
# Parameter construction (PyTorch layout) + kernel-layout preparation
# --------------------------------------------------------------------------- #
def init_params(key, embed_dim):
    """Xavier-uniform init matching the module's reset_parameters (PyTorch layout)."""
    k1, k2 = jax.random.split(key)
    b_qkv = math.sqrt(6.0 / (embed_dim + 3 * embed_dim))
    w_qkv = jax.random.uniform(k1, (3 * embed_dim, embed_dim),
                               minval=-b_qkv, maxval=b_qkv, dtype=jnp.float32)
    b_out = math.sqrt(6.0 / (embed_dim + embed_dim))
    w_out = jax.random.uniform(k2, (embed_dim, embed_dim),
                               minval=-b_out, maxval=b_out, dtype=jnp.float32)
    return {
        "w_qkv": w_qkv,                                  # (3E, E) PyTorch layout
        "b_qkv": jnp.zeros((3 * embed_dim,), jnp.float32),
        "w_out": w_out,                                  # (E, E)  PyTorch layout
        "b_out": jnp.zeros((embed_dim,), jnp.float32),
        "gamma": jnp.ones((embed_dim,), jnp.float32),    # LayerNorm defaults
        "beta": jnp.zeros((embed_dim,), jnp.float32),
    }


def _head_major_perm(embed_dim, num_heads):
    """Column permutation: PyTorch interleaved [h: q|k|v] -> head-major Q|K|V."""
    hd = embed_dim // num_heads
    idx = np.arange(3 * embed_dim).reshape(num_heads, 3, hd)     # (h, {q,k,v}, d)
    return np.concatenate([idx[:, c, :].reshape(-1) for c in range(3)])


def prepare_kernel_params(params, num_heads, *, matmul_dtype=jnp.bfloat16):
    """Host-side (free) weight re-layout for the kernel:
      * Wqkv transposed to (E, 3E), columns permuted to head-major Q|K|V;
      * 1/sqrt(head_dim) folded into the Q columns and the Q bias;
      * matmul weights cast to bf16 (f32 accumulation on the MXU)."""
    embed_dim = params["w_out"].shape[0]
    head_dim = embed_dim // num_heads
    perm = _head_major_perm(embed_dim, num_heads)
    scale = np.ones((3 * embed_dim,), np.float32)
    scale[:embed_dim] = 1.0 / math.sqrt(head_dim)                # Q block of permuted layout
    wqkv = jnp.asarray(params["w_qkv"], jnp.float32).T[:, perm] * scale[None, :]
    bqkv = jnp.asarray(params["b_qkv"], jnp.float32)[perm] * scale
    wout = jnp.asarray(params["w_out"], jnp.float32).T           # (E, E)
    return {
        "wqkv": wqkv.astype(matmul_dtype),
        "bqkv": bqkv[None, :].astype(jnp.float32),
        "wout": wout.astype(matmul_dtype),
        "bout": jnp.asarray(params["b_out"])[None, :].astype(jnp.float32),
        "gamma": jnp.asarray(params["gamma"])[None, :].astype(jnp.float32),
        "beta": jnp.asarray(params["beta"])[None, :].astype(jnp.float32),
    }


# --------------------------------------------------------------------------- #
# Pure-JAX reference (mirrors the PyTorch forward, f32, dropout = identity)
# --------------------------------------------------------------------------- #
def reference_forward(x_sbe, params, *, num_heads):
    S, B, E = x_sbe.shape
    hd = E // num_heads
    qkv = x_sbe @ params["w_qkv"].T + params["b_qkv"]                  # (S, B, 3E)
    qkv = qkv.reshape(S, B, num_heads, 3 * hd).transpose(1, 2, 0, 3)   # (B,H,S,3hd)
    q, k, v = qkv[..., :hd], qkv[..., hd:2 * hd], qkv[..., 2 * hd:]
    attn = jnp.einsum("bhsd,bhtd->bhst", q, k) / math.sqrt(hd)
    attn = jax.nn.softmax(attn, axis=-1)
    ao = jnp.einsum("bhst,bhtd->bhsd", attn, v)
    ao = ao.transpose(2, 0, 1, 3).reshape(S, B, E)
    out = ao @ params["w_out"].T + params["b_out"]
    res = x_sbe + out
    mean = res.mean(-1, keepdims=True)
    var = ((res - mean) ** 2).mean(-1, keepdims=True)
    ln = (res - mean) / jnp.sqrt(var + 1e-5) * params["gamma"] + params["beta"]
    return jnp.where(ln > 0, ln, jnp.exp(jnp.minimum(ln, 0.0)) - 1.0)


# --------------------------------------------------------------------------- #
# Demo / self-test
# --------------------------------------------------------------------------- #
if __name__ == "__main__":
    seq_len, batch, embed_dim, num_heads = 8, 2, 32, 4

    key = jax.random.PRNGKey(0)
    kx, kp = jax.random.split(key)
    # Activations generated directly in the kernel's (B, S, E) layout so the hot
    # path has no HBM transposes.
    x_bse = jax.random.normal(kx, (batch, seq_len, embed_dim), dtype=jnp.float32)
    params = init_params(kp, embed_dim)
    kparams = prepare_kernel_params(params, num_heads)

    try:
        out_bse = jax.block_until_ready(
            temporal_self_attention_bse(x_bse, kparams, num_heads=num_heads))
    except Exception:
        # Lane-dense (B, S*E) I/O needs an in-kernel lane reshape that may not lower
        # on every Mosaic toolchain; retry with plain (B, S, E) blocks.
        out_bse = jax.block_until_ready(
            temporal_self_attention_bse(x_bse, kparams, num_heads=num_heads,
                                        lane_dense_io=False))

    # Reference in the module's (S, B, E) layout (transposes only on the
    # verification path).
    x_sbe = jnp.transpose(x_bse, (1, 0, 2))
    ref_sbe = reference_forward(x_sbe, params, num_heads=num_heads)
    ref_bse = jnp.transpose(ref_sbe, (1, 0, 2))

    # bf16 activations + bf16 matmul inputs (f32 accumulation) vs the f32 reference.
    np.testing.assert_allclose(np.asarray(out_bse), np.asarray(ref_bse),
                               rtol=3e-2, atol=3e-2)
    print("KERNEL_OK")
</pallas_src>

<mosaic_0001>
module attributes {stable_mosaic.version = 11 : i64} {
  func.func @temporal_attn_kernel(%arg0: i32, %arg1: memref<2x256xbf16, #tpu.memory_space<vmem>>, %arg2: memref<32x96xbf16, #tpu.memory_space<vmem>>, %arg3: memref<1x96xf32, #tpu.memory_space<vmem>>, %arg4: memref<32x32xbf16, #tpu.memory_space<vmem>>, %arg5: memref<1x32xf32, #tpu.memory_space<vmem>>, %arg6: memref<1x32xf32, #tpu.memory_space<vmem>>, %arg7: memref<1x32xf32, #tpu.memory_space<vmem>>, %arg8: memref<2x256xf32, #tpu.memory_space<vmem>>) attributes {dimension_semantics = [#tpu.dimension_semantics<parallel>], iteration_bounds = array<i64: 1>, scalar_prefetch = 0 : i64, scratch_operands = 0 : i64, tpu.core_type = #tpu.core_type<tc>, window_params = [{transform_indices = @transform_0, window_bounds = array<i64: 2, 256>}, {pipeline_mode = #tpu.pipeline_mode<synchronous>, transform_indices = @transform_1, window_bounds = array<i64: 32, 96>}, {pipeline_mode = #tpu.pipeline_mode<synchronous>, transform_indices = @transform_2, window_bounds = array<i64: 1, 96>}, {pipeline_mode = #tpu.pipeline_mode<synchronous>, transform_indices = @transform_3, window_bounds = array<i64: 32, 32>}, {pipeline_mode = #tpu.pipeline_mode<synchronous>, transform_indices = @transform_4, window_bounds = array<i64: 1, 32>}, {pipeline_mode = #tpu.pipeline_mode<synchronous>, transform_indices = @transform_5, window_bounds = array<i64: 1, 32>}, {pipeline_mode = #tpu.pipeline_mode<synchronous>, transform_indices = @transform_6, window_bounds = array<i64: 1, 32>}, {transform_indices = @transform_7, window_bounds = array<i64: 2, 256>}]} {
    %c0 = arith.constant 0 : index
    %c0_0 = arith.constant 0 : index
    %0 = vector.load %arg1[%c0, %c0_0] : memref<2x256xbf16, #tpu.memory_space<vmem>>, vector<2x256xbf16>
    %1 = vector.shape_cast %0 : vector<2x256xbf16> to vector<16x32xbf16>
    %c0_1 = arith.constant 0 : index
    %c0_2 = arith.constant 0 : index
    %2 = vector.load %arg2[%c0_1, %c0_2] : memref<32x96xbf16, #tpu.memory_space<vmem>>, vector<32x96xbf16>
    %c0_3 = arith.constant 0 : index
    %c0_4 = arith.constant 0 : index
    %3 = vector.load %arg4[%c0_3, %c0_4] : memref<32x32xbf16, #tpu.memory_space<vmem>>, vector<32x32xbf16>
    %c0_5 = arith.constant 0 : index
    %c0_6 = arith.constant 0 : index
    %4 = vector.load %arg3[%c0_5, %c0_6] : memref<1x96xf32, #tpu.memory_space<vmem>>, vector<1x96xf32>
    %c0_7 = arith.constant 0 : index
    %c0_8 = arith.constant 0 : index
    %5 = vector.load %arg5[%c0_7, %c0_8] : memref<1x32xf32, #tpu.memory_space<vmem>>, vector<1x32xf32>
    %c0_9 = arith.constant 0 : index
    %c0_10 = arith.constant 0 : index
    %6 = vector.load %arg6[%c0_9, %c0_10] : memref<1x32xf32, #tpu.memory_space<vmem>>, vector<1x32xf32>
    %c0_11 = arith.constant 0 : index
    %c0_12 = arith.constant 0 : index
    %7 = vector.load %arg7[%c0_11, %c0_12] : memref<1x32xf32, #tpu.memory_space<vmem>>, vector<1x32xf32>
    %cst = arith.constant dense<0.000000e+00> : vector<16x96xf32>
    %8 = tpu.matmul %1, %2, %cst {dimension_numbers = #tpu.dot_dimension_numbers<[1], [0], [0], [1], [0, 0, 1, 1], [], []>} : vector<16x32xbf16>, vector<32x96xbf16>, vector<16x96xf32> -> vector<16x96xf32>
    %9 = vector.broadcast %4 : vector<1x96xf32> to vector<16x96xf32>
    %10 = arith.addf %8, %9 : vector<16x96xf32>
    %11 = vector.extract_strided_slice %10 {offsets = [0, 0], sizes = [16, 8], strides = [1, 1]} : vector<16x96xf32> to vector<16x8xf32>
    %12 = vector.shape_cast %11 : vector<16x8xf32> to vector<2x8x8xf32>
    %13 = vector.extract_strided_slice %10 {offsets = [0, 8], sizes = [16, 8], strides = [1, 1]} : vector<16x96xf32> to vector<16x8xf32>
    %14 = vector.shape_cast %13 : vector<16x8xf32> to vector<2x8x8xf32>
    %15 = vector.extract_strided_slice %10 {offsets = [0, 16], sizes = [16, 8], strides = [1, 1]} : vector<16x96xf32> to vector<16x8xf32>
    %16 = vector.shape_cast %15 : vector<16x8xf32> to vector<2x8x8xf32>
    %17 = vector.extract_strided_slice %10 {offsets = [0, 24], sizes = [16, 8], strides = [1, 1]} : vector<16x96xf32> to vector<16x8xf32>
    %18 = vector.shape_cast %17 : vector<16x8xf32> to vector<2x8x8xf32>
    %19 = tpu.concatenate %12, %14, %16, %18 in 0 : vector<2x8x8xf32>, vector<2x8x8xf32>, vector<2x8x8xf32>, vector<2x8x8xf32> -> vector<8x8x8xf32>
    %20 = vector.extract_strided_slice %10 {offsets = [0, 32], sizes = [16, 8], strides = [1, 1]} : vector<16x96xf32> to vector<16x8xf32>
    %21 = vector.shape_cast %20 : vector<16x8xf32> to vector<2x8x8xf32>
    %22 = vector.extract_strided_slice %10 {offsets = [0, 40], sizes = [16, 8], strides = [1, 1]} : vector<16x96xf32> to vector<16x8xf32>
    %23 = vector.shape_cast %22 : vector<16x8xf32> to vector<2x8x8xf32>
    %24 = vector.extract_strided_slice %10 {offsets = [0, 48], sizes = [16, 8], strides = [1, 1]} : vector<16x96xf32> to vector<16x8xf32>
    %25 = vector.shape_cast %24 : vector<16x8xf32> to vector<2x8x8xf32>
    %26 = vector.extract_strided_slice %10 {offsets = [0, 56], sizes = [16, 8], strides = [1, 1]} : vector<16x96xf32> to vector<16x8xf32>
    %27 = vector.shape_cast %26 : vector<16x8xf32> to vector<2x8x8xf32>
    %28 = tpu.concatenate %21, %23, %25, %27 in 0 : vector<2x8x8xf32>, vector<2x8x8xf32>, vector<2x8x8xf32>, vector<2x8x8xf32> -> vector<8x8x8xf32>
    %29 = vector.extract_strided_slice %10 {offsets = [0, 64], sizes = [16, 8], strides = [1, 1]} : vector<16x96xf32> to vector<16x8xf32>
    %30 = vector.shape_cast %29 : vector<16x8xf32> to vector<2x8x8xf32>
    %31 = vector.extract_strided_slice %10 {offsets = [0, 72], sizes = [16, 8], strides = [1, 1]} : vector<16x96xf32> to vector<16x8xf32>
    %32 = vector.shape_cast %31 : vector<16x8xf32> to vector<2x8x8xf32>
    %33 = vector.extract_strided_slice %10 {offsets = [0, 80], sizes = [16, 8], strides = [1, 1]} : vector<16x96xf32> to vector<16x8xf32>
    %34 = vector.shape_cast %33 : vector<16x8xf32> to vector<2x8x8xf32>
    %35 = vector.extract_strided_slice %10 {offsets = [0, 88], sizes = [16, 8], strides = [1, 1]} : vector<16x96xf32> to vector<16x8xf32>
    %36 = vector.shape_cast %35 : vector<16x8xf32> to vector<2x8x8xf32>
    %37 = tpu.concatenate %30, %32, %34, %36 in 0 : vector<2x8x8xf32>, vector<2x8x8xf32>, vector<2x8x8xf32>, vector<2x8x8xf32> -> vector<8x8x8xf32>
    %38 = arith.truncf %19 : vector<8x8x8xf32> to vector<8x8x8xbf16>
    %39 = arith.truncf %28 : vector<8x8x8xf32> to vector<8x8x8xbf16>
    %cst_13 = arith.constant dense<0.000000e+00> : vector<8x8x8xf32>
    %40 = tpu.matmul %38, %39, %cst_13 {dimension_numbers = #tpu.dot_dimension_numbers<[2], [2], [1], [1], [0, 0, 0, 1, 1, 1], [0], [0]>} : vector<8x8x8xbf16>, vector<8x8x8xbf16>, vector<8x8x8xf32> -> vector<8x8x8xf32>
    %cst_14 = arith.constant dense<0xFF800000> : vector<8x8xf32>
    %41 = vector.multi_reduction <maximumf>, %40, %cst_14 [2] : vector<8x8x8xf32> to vector<8x8xf32>
    %42 = vector.shape_cast %41 : vector<8x8xf32> to vector<8x8x1xf32>
    %43 = vector.broadcast %42 : vector<8x8x1xf32> to vector<8x8x8xf32>
    %44 = arith.subf %40, %43 : vector<8x8x8xf32>
    %45 = math.exp %44 : vector<8x8x8xf32>
    %cst_15 = arith.constant dense<0.000000e+00> : vector<8x8xf32>
    %46 = vector.multi_reduction <add>, %45, %cst_15 [2] : vector<8x8x8xf32> to vector<8x8xf32>
    %47 = vector.shape_cast %46 : vector<8x8xf32> to vector<8x8x1xf32>
    %48 = tpu.reciprocal %47 {approx = true} : vector<8x8x1xf32> -> vector<8x8x1xf32>
    %49 = vector.broadcast %48 : vector<8x8x1xf32> to vector<8x8x8xf32>
    %50 = arith.mulf %45, %49 : vector<8x8x8xf32>
    %51 = arith.truncf %50 : vector<8x8x8xf32> to vector<8x8x8xbf16>
    %52 = arith.truncf %37 : vector<8x8x8xf32> to vector<8x8x8xbf16>
    %cst_16 = arith.constant dense<0.000000e+00> : vector<8x8x8xf32>
    %53 = tpu.matmul %51, %52, %cst_16 {dimension_numbers = #tpu.dot_dimension_numbers<[2], [1], [1], [2], [0, 0, 0, 1, 1, 2], [0], [0]>} : vector<8x8x8xbf16>, vector<8x8x8xbf16>, vector<8x8x8xf32> -> vector<8x8x8xf32>
    %54 = vector.shape_cast %53 : vector<8x8x8xf32> to vector<4x16x8xf32>
    %55 = vector.shape_cast %3 : vector<32x32xbf16> to vector<4x8x32xbf16>
    %56 = arith.truncf %54 : vector<4x16x8xf32> to vector<4x16x8xbf16>
    %cst_17 = arith.constant dense<0.000000e+00> : vector<4x16x32xf32>
    %57 = tpu.matmul %56, %55, %cst_17 {dimension_numbers = #tpu.dot_dimension_numbers<[2], [1], [1], [2], [0, 0, 0, 1, 1, 2], [0], [0]>} : vector<4x16x8xbf16>, vector<4x8x32xbf16>, vector<4x16x32xf32> -> vector<4x16x32xf32>
    %cst_18 = arith.constant dense<0.000000e+00> : vector<16x32xf32>
    %58 = vector.multi_reduction <add>, %57, %cst_18 [0] : vector<4x16x32xf32> to vector<16x32xf32>
    %59 = vector.broadcast %5 : vector<1x32xf32> to vector<16x32xf32>
    %60 = arith.addf %58, %59 : vector<16x32xf32>
    %61 = arith.extf %1 : vector<16x32xbf16> to vector<16x32xf32>
    %62 = arith.addf %61, %60 : vector<16x32xf32>
    %cst_19 = arith.constant dense<0.000000e+00> : vector<16xf32>
    %63 = vector.multi_reduction <add>, %62, %cst_19 [1] : vector<16x32xf32> to vector<16xf32>
    %64 = vector.shape_cast %63 : vector<16xf32> to vector<16x1xf32>
    %cst_20 = arith.constant 3.200000e+01 : f32
    %65 = vector.broadcast %cst_20 : f32 to vector<16x1xf32>
    %66 = arith.divf %64, %65 : vector<16x1xf32>
    %67 = vector.broadcast %66 : vector<16x1xf32> to vector<16x32xf32>
    %68 = arith.subf %62, %67 : vector<16x32xf32>
    %69 = arith.mulf %68, %68 : vector<16x32xf32>
    %cst_21 = arith.constant dense<0.000000e+00> : vector<16xf32>
    %70 = vector.multi_reduction <add>, %69, %cst_21 [1] : vector<16x32xf32> to vector<16xf32>
    %71 = vector.shape_cast %70 : vector<16xf32> to vector<16x1xf32>
    %cst_22 = arith.constant 3.200000e+01 : f32
    %72 = vector.broadcast %cst_22 : f32 to vector<16x1xf32>
    %73 = arith.divf %71, %72 : vector<16x1xf32>
    %cst_23 = arith.constant 9.99999974E-6 : f32
    %74 = vector.broadcast %cst_23 : f32 to vector<16x1xf32>
    %75 = arith.addf %73, %74 : vector<16x1xf32>
    %76 = math.rsqrt %75 : vector<16x1xf32>
    %77 = vector.broadcast %76 : vector<16x1xf32> to vector<16x32xf32>
    %78 = arith.mulf %68, %77 : vector<16x32xf32>
    %79 = vector.broadcast %6 : vector<1x32xf32> to vector<16x32xf32>
    %80 = arith.mulf %78, %79 : vector<16x32xf32>
    %81 = vector.broadcast %7 : vector<1x32xf32> to vector<16x32xf32>
    %82 = arith.addf %80, %81 : vector<16x32xf32>
    %cst_24 = arith.constant 0.000000e+00 : f32
    %83 = vector.broadcast %cst_24 : f32 to vector<16x32xf32>
    %84 = arith.cmpf ogt, %82, %83 : vector<16x32xf32>
    %cst_25 = arith.constant 0.000000e+00 : f32
    %85 = vector.broadcast %cst_25 : f32 to vector<16x32xf32>
    %86 = arith.minimumf %82, %85 : vector<16x32xf32>
    %87 = math.exp %86 : vector<16x32xf32>
    %cst_26 = arith.constant 1.000000e+00 : f32
    %88 = vector.broadcast %cst_26 : f32 to vector<16x32xf32>
    %89 = arith.subf %87, %88 : vector<16x32xf32>
    %90 = arith.select %84, %82, %89 : vector<16x32xi1>, vector<16x32xf32>
    %91 = vector.shape_cast %90 : vector<16x32xf32> to vector<2x256xf32>
    %c0_27 = arith.constant 0 : index
    %c0_28 = arith.constant 0 : index
    %92 = vector.load %arg8[%c0_27, %c0_28] : memref<2x256xf32, #tpu.memory_space<vmem>>, vector<2x256xf32>
    tpu.vector_store %arg8[%c0_27, %c0_28], %91 {strides = array<i32>} : memref<2x256xf32, #tpu.memory_space<vmem>>, vector<2x256xf32>,
    return
  }
  func.func @transform_0(%arg0: i32) -> (i32, i32) {
    %c0_i32 = arith.constant 0 : i32
    %c0_i32_0 = arith.constant 0 : i32
    return %arg0, %c0_i32 : i32, i32
  }
  func.func @transform_1(%arg0: i32) -> (i32, i32) {
    %c0_i32 = arith.constant 0 : i32
    %c0_i32_0 = arith.constant 0 : i32
    %c0_i32_1 = arith.constant 0 : i32
    return %c0_i32, %c0_i32_0 : i32, i32
  }
  func.func @transform_2(%arg0: i32) -> (i32, i32) {
    %c0_i32 = arith.constant 0 : i32
    %c0_i32_0 = arith.constant 0 : i32
    %c0_i32_1 = arith.constant 0 : i32
    return %c0_i32, %c0_i32_0 : i32, i32
  }
  func.func @transform_3(%arg0: i32) -> (i32, i32) {
    %c0_i32 = arith.constant 0 : i32
    %c0_i32_0 = arith.constant 0 : i32
    %c0_i32_1 = arith.constant 0 : i32
    return %c0_i32, %c0_i32_0 : i32, i32
  }
  func.func @transform_4(%arg0: i32) -> (i32, i32) {
    %c0_i32 = arith.constant 0 : i32
    %c0_i32_0 = arith.constant 0 : i32
    %c0_i32_1 = arith.constant 0 : i32
    return %c0_i32, %c0_i32_0 : i32, i32
  }
  func.func @transform_5(%arg0: i32) -> (i32, i32) {
    %c0_i32 = arith.constant 0 : i32
    %c0_i32_0 = arith.constant 0 : i32
    %c0_i32_1 = arith.constant 0 : i32
    return %c0_i32, %c0_i32_0 : i32, i32
  }
  func.func @transform_6(%arg0: i32) -> (i32, i32) {
    %c0_i32 = arith.constant 0 : i32
    %c0_i32_0 = arith.constant 0 : i32
    %c0_i32_1 = arith.constant 0 : i32
    return %c0_i32, %c0_i32_0 : i32, i32
  }
  func.func @transform_7(%arg0: i32) -> (i32, i32) {
    %c0_i32 = arith.constant 0 : i32
    %c0_i32_0 = arith.constant 0 : i32
    return %arg0, %c0_i32 : i32, i32
  }
}

module attributes {stable_mosaic.version = 11 : i64} {
  func.func @temporal_attn_kernel(%arg0: i32, %arg1: memref<2x8x32xbf16, #tpu.memory_space<vmem>>, %arg2: memref<32x96xbf16, #tpu.memory_space<vmem>>, %arg3: memref<1x96xf32, #tpu.memory_space<vmem>>, %arg4: memref<32x32xbf16, #tpu.memory_space<vmem>>, %arg5: memref<1x32xf32, #tpu.memory_space<vmem>>, %arg6: memref<1x32xf32, #tpu.memory_space<vmem>>, %arg7: memref<1x32xf32, #tpu.memory_space<vmem>>, %arg8: memref<2x8x32xf32, #tpu.memory_space<vmem>>) attributes {dimension_semantics = [#tpu.dimension_semantics<parallel>], iteration_bounds = array<i64: 1>, scalar_prefetch = 0 : i64, scratch_operands = 0 : i64, tpu.core_type = #tpu.core_type<tc>, window_params = [{transform_indices = @transform_0, window_bounds = array<i64: 2, 8, 32>}, {pipeline_mode = #tpu.pipeline_mode<synchronous>, transform_indices = @transform_1, window_bounds = array<i64: 32, 96>}, {pipeline_mode = #tpu.pipeline_mode<synchronous>, transform_indices = @transform_2, window_bounds = array<i64: 1, 96>}, {pipeline_mode = #tpu.pipeline_mode<synchronous>, transform_indices = @transform_3, window_bounds = array<i64: 32, 32>}, {pipeline_mode = #tpu.pipeline_mode<synchronous>, transform_indices = @transform_4, window_bounds = array<i64: 1, 32>}, {pipeline_mode = #tpu.pipeline_mode<synchronous>, transform_indices = @transform_5, window_bounds = array<i64: 1, 32>}, {pipeline_mode = #tpu.pipeline_mode<synchronous>, transform_indices = @transform_6, window_bounds = array<i64: 1, 32>}, {transform_indices = @transform_7, window_bounds = array<i64: 2, 8, 32>}]} {
    %c0 = arith.constant 0 : index
    %c0_0 = arith.constant 0 : index
    %c0_1 = arith.constant 0 : index
    %0 = vector.load %arg1[%c0, %c0_0, %c0_1] : memref<2x8x32xbf16, #tpu.memory_space<vmem>>, vector<2x8x32xbf16>
    %1 = vector.shape_cast %0 : vector<2x8x32xbf16> to vector<16x32xbf16>
    %c0_2 = arith.constant 0 : index
    %c0_3 = arith.constant 0 : index
    %2 = vector.load %arg2[%c0_2, %c0_3] : memref<32x96xbf16, #tpu.memory_space<vmem>>, vector<32x96xbf16>
    %c0_4 = arith.constant 0 : index
    %c0_5 = arith.constant 0 : index
    %3 = vector.load %arg4[%c0_4, %c0_5] : memref<32x32xbf16, #tpu.memory_space<vmem>>, vector<32x32xbf16>
    %c0_6 = arith.constant 0 : index
    %c0_7 = arith.constant 0 : index
    %4 = vector.load %arg3[%c0_6, %c0_7] : memref<1x96xf32, #tpu.memory_space<vmem>>, vector<1x96xf32>
    %c0_8 = arith.constant 0 : index
    %c0_9 = arith.constant 0 : index
    %5 = vector.load %arg5[%c0_8, %c0_9] : memref<1x32xf32, #tpu.memory_space<vmem>>, vector<1x32xf32>
    %c0_10 = arith.constant 0 : index
    %c0_11 = arith.constant 0 : index
    %6 = vector.load %arg6[%c0_10, %c0_11] : memref<1x32xf32, #tpu.memory_space<vmem>>, vector<1x32xf32>
    %c0_12 = arith.constant 0 : index
    %c0_13 = arith.constant 0 : index
    %7 = vector.load %arg7[%c0_12, %c0_13] : memref<1x32xf32, #tpu.memory_space<vmem>>, vector<1x32xf32>
    %cst = arith.constant dense<0.000000e+00> : vector<16x96xf32>
    %8 = tpu.matmul %1, %2, %cst {dimension_numbers = #tpu.dot_dimension_numbers<[1], [0], [0], [1], [0, 0, 1, 1], [], []>} : vector<16x32xbf16>, vector<32x96xbf16>, vector<16x96xf32> -> vector<16x96xf32>
    %9 = vector.broadcast %4 : vector<1x96xf32> to vector<16x96xf32>
    %10 = arith.addf %8, %9 : vector<16x96xf32>
    %11 = vector.extract_strided_slice %10 {offsets = [0, 0], sizes = [16, 8], strides = [1, 1]} : vector<16x96xf32> to vector<16x8xf32>
    %12 = vector.shape_cast %11 : vector<16x8xf32> to vector<2x8x8xf32>
    %13 = vector.extract_strided_slice %10 {offsets = [0, 8], sizes = [16, 8], strides = [1, 1]} : vector<16x96xf32> to vector<16x8xf32>
    %14 = vector.shape_cast %13 : vector<16x8xf32> to vector<2x8x8xf32>
    %15 = vector.extract_strided_slice %10 {offsets = [0, 16], sizes = [16, 8], strides = [1, 1]} : vector<16x96xf32> to vector<16x8xf32>
    %16 = vector.shape_cast %15 : vector<16x8xf32> to vector<2x8x8xf32>
    %17 = vector.extract_strided_slice %10 {offsets = [0, 24], sizes = [16, 8], strides = [1, 1]} : vector<16x96xf32> to vector<16x8xf32>
    %18 = vector.shape_cast %17 : vector<16x8xf32> to vector<2x8x8xf32>
    %19 = tpu.concatenate %12, %14, %16, %18 in 0 : vector<2x8x8xf32>, vector<2x8x8xf32>, vector<2x8x8xf32>, vector<2x8x8xf32> -> vector<8x8x8xf32>
    %20 = vector.extract_strided_slice %10 {offsets = [0, 32], sizes = [16, 8], strides = [1, 1]} : vector<16x96xf32> to vector<16x8xf32>
    %21 = vector.shape_cast %20 : vector<16x8xf32> to vector<2x8x8xf32>
    %22 = vector.extract_strided_slice %10 {offsets = [0, 40], sizes = [16, 8], strides = [1, 1]} : vector<16x96xf32> to vector<16x8xf32>
    %23 = vector.shape_cast %22 : vector<16x8xf32> to vector<2x8x8xf32>
    %24 = vector.extract_strided_slice %10 {offsets = [0, 48], sizes = [16, 8], strides = [1, 1]} : vector<16x96xf32> to vector<16x8xf32>
    %25 = vector.shape_cast %24 : vector<16x8xf32> to vector<2x8x8xf32>
    %26 = vector.extract_strided_slice %10 {offsets = [0, 56], sizes = [16, 8], strides = [1, 1]} : vector<16x96xf32> to vector<16x8xf32>
    %27 = vector.shape_cast %26 : vector<16x8xf32> to vector<2x8x8xf32>
    %28 = tpu.concatenate %21, %23, %25, %27 in 0 : vector<2x8x8xf32>, vector<2x8x8xf32>, vector<2x8x8xf32>, vector<2x8x8xf32> -> vector<8x8x8xf32>
    %29 = vector.extract_strided_slice %10 {offsets = [0, 64], sizes = [16, 8], strides = [1, 1]} : vector<16x96xf32> to vector<16x8xf32>
    %30 = vector.shape_cast %29 : vector<16x8xf32> to vector<2x8x8xf32>
    %31 = vector.extract_strided_slice %10 {offsets = [0, 72], sizes = [16, 8], strides = [1, 1]} : vector<16x96xf32> to vector<16x8xf32>
    %32 = vector.shape_cast %31 : vector<16x8xf32> to vector<2x8x8xf32>
    %33 = vector.extract_strided_slice %10 {offsets = [0, 80], sizes = [16, 8], strides = [1, 1]} : vector<16x96xf32> to vector<16x8xf32>
    %34 = vector.shape_cast %33 : vector<16x8xf32> to vector<2x8x8xf32>
    %35 = vector.extract_strided_slice %10 {offsets = [0, 88], sizes = [16, 8], strides = [1, 1]} : vector<16x96xf32> to vector<16x8xf32>
    %36 = vector.shape_cast %35 : vector<16x8xf32> to vector<2x8x8xf32>
    %37 = tpu.concatenate %30, %32, %34, %36 in 0 : vector<2x8x8xf32>, vector<2x8x8xf32>, vector<2x8x8xf32>, vector<2x8x8xf32> -> vector<8x8x8xf32>
    %38 = arith.truncf %19 : vector<8x8x8xf32> to vector<8x8x8xbf16>
    %39 = arith.truncf %28 : vector<8x8x8xf32> to vector<8x8x8xbf16>
    %cst_14 = arith.constant dense<0.000000e+00> : vector<8x8x8xf32>
    %40 = tpu.matmul %38, %39, %cst_14 {dimension_numbers = #tpu.dot_dimension_numbers<[2], [2], [1], [1], [0, 0, 0, 1, 1, 1], [0], [0]>} : vector<8x8x8xbf16>, vector<8x8x8xbf16>, vector<8x8x8xf32> -> vector<8x8x8xf32>
    %cst_15 = arith.constant dense<0xFF800000> : vector<8x8xf32>
    %41 = vector.multi_reduction <maximumf>, %40, %cst_15 [2] : vector<8x8x8xf32> to vector<8x8xf32>
    %42 = vector.shape_cast %41 : vector<8x8xf32> to vector<8x8x1xf32>
    %43 = vector.broadcast %42 : vector<8x8x1xf32> to vector<8x8x8xf32>
    %44 = arith.subf %40, %43 : vector<8x8x8xf32>
    %45 = math.exp %44 : vector<8x8x8xf32>
    %cst_16 = arith.constant dense<0.000000e+00> : vector<8x8xf32>
    %46 = vector.multi_reduction <add>, %45, %cst_16 [2] : vector<8x8x8xf32> to vector<8x8xf32>
    %47 = vector.shape_cast %46 : vector<8x8xf32> to vector<8x8x1xf32>
    %48 = tpu.reciprocal %47 {approx = true} : vector<8x8x1xf32> -> vector<8x8x1xf32>
    %49 = vector.broadcast %48 : vector<8x8x1xf32> to vector<8x8x8xf32>
    %50 = arith.mulf %45, %49 : vector<8x8x8xf32>
    %51 = arith.truncf %50 : vector<8x8x8xf32> to vector<8x8x8xbf16>
    %52 = arith.truncf %37 : vector<8x8x8xf32> to vector<8x8x8xbf16>
    %cst_17 = arith.constant dense<0.000000e+00> : vector<8x8x8xf32>
    %53 = tpu.matmul %51, %52, %cst_17 {dimension_numbers = #tpu.dot_dimension_numbers<[2], [1], [1], [2], [0, 0, 0, 1, 1, 2], [0], [0]>} : vector<8x8x8xbf16>, vector<8x8x8xbf16>, vector<8x8x8xf32> -> vector<8x8x8xf32>
    %54 = vector.shape_cast %53 : vector<8x8x8xf32> to vector<4x16x8xf32>
    %55 = vector.shape_cast %3 : vector<32x32xbf16> to vector<4x8x32xbf16>
    %56 = arith.truncf %54 : vector<4x16x8xf32> to vector<4x16x8xbf16>
    %cst_18 = arith.constant dense<0.000000e+00> : vector<4x16x32xf32>
    %57 = tpu.matmul %56, %55, %cst_18 {dimension_numbers = #tpu.dot_dimension_numbers<[2], [1], [1], [2], [0, 0, 0, 1, 1, 2], [0], [0]>} : vector<4x16x8xbf16>, vector<4x8x32xbf16>, vector<4x16x32xf32> -> vector<4x16x32xf32>
    %cst_19 = arith.constant dense<0.000000e+00> : vector<16x32xf32>
    %58 = vector.multi_reduction <add>, %57, %cst_19 [0] : vector<4x16x32xf32> to vector<16x32xf32>
    %59 = vector.broadcast %5 : vector<1x32xf32> to vector<16x32xf32>
    %60 = arith.addf %58, %59 : vector<16x32xf32>
    %61 = arith.extf %1 : vector<16x32xbf16> to vector<16x32xf32>
    %62 = arith.addf %61, %60 : vector<16x32xf32>
    %cst_20 = arith.constant dense<0.000000e+00> : vector<16xf32>
    %63 = vector.multi_reduction <add>, %62, %cst_20 [1] : vector<16x32xf32> to vector<16xf32>
    %64 = vector.shape_cast %63 : vector<16xf32> to vector<16x1xf32>
    %cst_21 = arith.constant 3.200000e+01 : f32
    %65 = vector.broadcast %cst_21 : f32 to vector<16x1xf32>
    %66 = arith.divf %64, %65 : vector<16x1xf32>
    %67 = vector.broadcast %66 : vector<16x1xf32> to vector<16x32xf32>
    %68 = arith.subf %62, %67 : vector<16x32xf32>
    %69 = arith.mulf %68, %68 : vector<16x32xf32>
    %cst_22 = arith.constant dense<0.000000e+00> : vector<16xf32>
    %70 = vector.multi_reduction <add>, %69, %cst_22 [1] : vector<16x32xf32> to vector<16xf32>
    %71 = vector.shape_cast %70 : vector<16xf32> to vector<16x1xf32>
    %cst_23 = arith.constant 3.200000e+01 : f32
    %72 = vector.broadcast %cst_23 : f32 to vector<16x1xf32>
    %73 = arith.divf %71, %72 : vector<16x1xf32>
    %cst_24 = arith.constant 9.99999974E-6 : f32
    %74 = vector.broadcast %cst_24 : f32 to vector<16x1xf32>
    %75 = arith.addf %73, %74 : vector<16x1xf32>
    %76 = math.rsqrt %75 : vector<16x1xf32>
    %77 = vector.broadcast %76 : vector<16x1xf32> to vector<16x32xf32>
    %78 = arith.mulf %68, %77 : vector<16x32xf32>
    %79 = vector.broadcast %6 : vector<1x32xf32> to vector<16x32xf32>
    %80 = arith.mulf %78, %79 : vector<16x32xf32>
    %81 = vector.broadcast %7 : vector<1x32xf32> to vector<16x32xf32>
    %82 = arith.addf %80, %81 : vector<16x32xf32>
    %cst_25 = arith.constant 0.000000e+00 : f32
    %83 = vector.broadcast %cst_25 : f32 to vector<16x32xf32>
    %84 = arith.cmpf ogt, %82, %83 : vector<16x32xf32>
    %cst_26 = arith.constant 0.000000e+00 : f32
    %85 = vector.broadcast %cst_26 : f32 to vector<16x32xf32>
    %86 = arith.minimumf %82, %85 : vector<16x32xf32>
    %87 = math.exp %86 : vector<16x32xf32>
    %cst_27 = arith.constant 1.000000e+00 : f32
    %88 = vector.broadcast %cst_27 : f32 to vector<16x32xf32>
    %89 = arith.subf %87, %88 : vector<16x32xf32>
    %90 = arith.select %84, %82, %89 : vector<16x32xi1>, vector<16x32xf32>
    %91 = vector.shape_cast %90 : vector<16x32xf32> to vector<2x8x32xf32>
    %c0_28 = arith.constant 0 : index
    %c0_29 = arith.constant 0 : index
    %c0_30 = arith.constant 0 : index
    %92 = vector.load %arg8[%c0_28, %c0_29, %c0_30] : memref<2x8x32xf32, #tpu.memory_space<vmem>>, vector<2x8x32xf32>
    tpu.vector_store %arg8[%c0_28, %c0_29, %c0_30], %91 {strides = array<i32>} : memref<2x8x32xf32, #tpu.memory_space<vmem>>, vector<2x8x32xf32>,
    return
  }
  func.func @transform_0(%arg0: i32) -> (i32, i32, i32) {
    %c0_i32 = arith.constant 0 : i32
    %c0_i32_0 = arith.constant 0 : i32
    %c0_i32_1 = arith.constant 0 : i32
    return %arg0, %c0_i32, %c0_i32_0 : i32, i32, i32
  }
  func.func @transform_1(%arg0: i32) -> (i32, i32) {
    %c0_i32 = arith.constant 0 : i32
    %c0_i32_0 = arith.constant 0 : i32
    %c0_i32_1 = arith.constant 0 : i32
    return %c0_i32, %c0_i32_0 : i32, i32
  }
  func.func @transform_2(%arg0: i32) -> (i32, i32) {
    %c0_i32 = arith.constant 0 : i32
    %c0_i32_0 = arith.constant 0 : i32
    %c0_i32_1 = arith.constant 0 : i32
    return %c0_i32, %c0_i32_0 : i32, i32
  }
  func.func @transform_3(%arg0: i32) -> (i32, i32) {
    %c0_i32 = arith.constant 0 : i32
    %c0_i32_0 = arith.constant 0 : i32
    %c0_i32_1 = arith.constant 0 : i32
    return %c0_i32, %c0_i32_0 : i32, i32
  }
  func.func @transform_4(%arg0: i32) -> (i32, i32) {
    %c0_i32 = arith.constant 0 : i32
    %c0_i32_0 = arith.constant 0 : i32
    %c0_i32_1 = arith.constant 0 : i32
    return %c0_i32, %c0_i32_0 : i32, i32
  }
  func.func @transform_5(%arg0: i32) -> (i32, i32) {
    %c0_i32 = arith.constant 0 : i32
    %c0_i32_0 = arith.constant 0 : i32
    %c0_i32_1 = arith.constant 0 : i32
    return %c0_i32, %c0_i32_0 : i32, i32
  }
  func.func @transform_6(%arg0: i32) -> (i32, i32) {
    %c0_i32 = arith.constant 0 : i32
    %c0_i32_0 = arith.constant 0 : i32
    %c0_i32_1 = arith.constant 0 : i32
    return %c0_i32, %c0_i32_0 : i32, i32
  }
  func.func @transform_7(%arg0: i32) -> (i32, i32, i32) {
    %c0_i32 = arith.constant 0 : i32
    %c0_i32_0 = arith.constant 0 : i32
    %c0_i32_1 = arith.constant 0 : i32
    return %arg0, %c0_i32, %c0_i32_0 : i32, i32, i32
  }
}

</mosaic_0001>

<bundles_post_ra>
// kernel: tpu_custom_call.1
= control target key start
LH: loop header
LB: loop body
LE: loop exit
PB: predicated region body
PF: predicated region fallthrough
CT: control target
= control target key end

     0   :  { %12 = vsyncpa [#allocation3], 0  ;;  %s2000_s0 = inlined_call_operand.hbm [shape: bf16[2,8,32], index: 0, kind: input, shape index: {}]   ;;  %s2001_s1 = inlined_call_operand.hbm [shape: bf16[32,96], index: 1, kind: input, shape index: {}]   ;;  %s2002_s2 = inlined_call_operand.vmem [shape: f32[1,96], index: 2, kind: input, shape index: {}]   ;;  %s2003_s3 = inlined_call_operand.hbm [shape: bf16[32,32], index: 3, kind: input, shape index: {}]   ;;  %s2004_s4 = inlined_call_operand.vmem [shape: f32[1,32], index: 4, kind: input, shape index: {}]   ;;  %s2005_s5 = inlined_call_operand.vmem [shape: f32[1,32], index: 5, kind: input, shape index: {}]   ;;  %s2006_s6 = inlined_call_operand.vmem [shape: f32[1,32], index: 6, kind: input, shape index: {}]   ;;  %s2007_s7 = inlined_call_operand.hbm [shape: f32[2,8,32], index: 7, kind: output, shape index: {}]  }
   0x1   :  { %13 = vsyncpa [#allocation6], 0 }
   0x2   :  { %14 = vsyncpa [#allocation4], 0  ;;  %s1706_s24 = smov [#allocation5]   ;;  %s1707_s26 = smov [#allocation2]  }
   0x3   :  { %s32_s25 = sshll.u32 %s1706_s24, 4  ;;  %s20_s27 = sshll.u32 %s1707_s26, 4  ;;  %s33_s25 = int_to_ptr.vmem [resolvable:$true] %s32_s25  ;;  %s21_s27 = int_to_ptr.vmem [resolvable:$true] %s20_s27 }
   0x4   :  { %s1628_s28 = scalar_lea.vmem %s33_s25, 256  ;;  %p1633_p1 = scmp.lt.s32.totalorder %s33_s25, %s33_s25 }
   0x5   :  { %p1629_p0 = scmp.ne.s32.totalorder %s33_s25, %s1628_s28  ;;  %p1634_p2 = scmp.lt.s32.totalorder %s1628_s28, %s1628_s28 }
   0x7   :  { %p1635_p3 = por %p1634_p2, %p1633_p1 }
   0x9   :  { %p1636_p4 = pnand %p1635_p3, %p1629_p0 }
   0xb   :  { %1639 = shalt.err (!%p1636_p4)
}
   0xc   :  { %s1708_s29 = smov 64   ;;  %s1709_s30 = smov 4  }
   0xd   :  { %38 = dma.hbm_to_vmem [thread:$0]  %s2001_s1, 256, %s33_s25, [#allocation6], %s1708_s29, %s1708_s29, %s1709_s30  }
   0xe   :  { %s1648_s10 = scalar_lea.vmem %s21_s27, 128  ;;  %p1653_p6 = scmp.lt.s32.totalorder %s21_s27, %s21_s27 }
   0xf   :  { %p1649_p5 = scmp.ne.s32.totalorder %s21_s27, %s1648_s10  ;;  %p1654_p7 = scmp.lt.s32.totalorder %s1648_s10, %s1648_s10 }
  0x11   :  { %p1655_p8 = por %p1654_p7, %p1653_p6 }
  0x13   :  { %p1656_p9 = pnand %p1655_p8, %p1649_p5 }
  0x15   :  { %1659 = shalt.err (!%p1656_p9)
}
  0x16   :  { %26 = dma.hbm_to_vmem [thread:$0]  %s2000_s0, 128, %s21_s27, [#allocation3], %s1708_s29, %s1708_s29, %s1709_s30  }
  0x17   :  { %s1710_s13 = smov [#allocation7]  }
  0x18   :  { %s46_s14 = sshll.u32 %s1710_s13, 4  ;;  %s47_s14 = int_to_ptr.vmem [resolvable:$true] %s46_s14 }
  0x19   :  { %s1668_s15 = scalar_lea.vmem %s47_s14, 256  ;;  %p1673_p11 = scmp.lt.s32.totalorder %s47_s14, %s47_s14 }
  0x1a   :  { %p1669_p10 = scmp.ne.s32.totalorder %s47_s14, %s1668_s15  ;;  %p1674_p12 = scmp.lt.s32.totalorder %s1668_s15, %s1668_s15 }
  0x1c   :  { %p1675_p13 = por %p1674_p12, %p1673_p11 }
  0x1e   :  { %p1676_p0 = pnand %p1675_p13, %p1669_p10 }
  0x20   :  { %1679 = shalt.err (!%p1676_p0)
}
  0x21   :  { %52 = dma.hbm_to_vmem [thread:$0]  %s2003_s3, 256, %s47_s14, [#allocation6], %s1708_s29, %s1708_s29, %s1709_s30  }
  0x22   :  { %1700 = dma.done.wait [#allocation3], 128  }
  0x23   :  { %1701 = vsyncadd [#allocation3], 4294967168 }
  0x24   :  { %1702 = dma.done.wait [#allocation6], 512  }
  0x25   :  { %1703 = vsyncadd [#allocation6], 4294966784  ;;  %v1711_v0 = vmov 0.0   ;;  %vm1712_vm0 = vmmov 0   ;;  %v1576_v1 = vld [vmem:[#allocation5 + $0x8] sm:$0xff]   ;;  %v1577_v2 = vld [vmem:[#allocation5] sm:$0xff]  }
  0x26   :  { %1419 = vmatprep.subr.bf16.mxu0 %v1711_v0  ;;  %1423 = vmatprep.mubr.msk.bf16.mxu0 %vm1712_vm0, %v1711_v0  ;;  %v1781_v3 = vld [vmem:[#allocation2] sm:$0xff]   ;;  %vm106_vm1 = vcmask 261120   ;;  %s1713_s17 = smov 104   ;;  %s1714_s18 = smov 120   ;;  %vm182_vm2 = vcmask 64512   ;;  %vm673_vm3 = vcmask 1043456  }
  0x27   :  { %1427 = vmatprep.subr.bf16.mxu1 %v1711_v0  ;;  %1429 = vmatprep.mubr.msk.bf16.mxu1 %vm1712_vm0, %v1711_v0  ;;  %v1346_v5 = vld [vmem:[%s2002_s2] ss:$0 sm:$0xff]  ;;  %s1715_s19 = smov 96   ;;  %s1716_s20 = smov 112  }
  0x28   :  { %1420 = vmatpush3.bf16.msra.mxu0 %v1576_v1 }
  0x29   :  { %1421 = vmatprep.subr.bf16.mxu0 %v1711_v0 }
  0x2c   :  { %1422 = vmatpush3.bf16.msra.mxu0 %v1577_v2 }
  0x2d   :  { %1433 = vmatprep.subr.bf16.mxu0 %v1711_v0 }
  0x2f   :  { %1424 = vmatmul.mubr.msk.bf16.vlgmr.msra.gmra.mxu0 %vm106_vm1, %v1781_v3 }
  0x30   :  { %1435 = vmatprep.mubr.msk.bf16.mxu0 %vm1712_vm0, %v1711_v0 }
  0xef   :  { %v144_v4 = vpop.f32.mrf.mxu0 }
  0xf0   :  { %v145_v8 = vadd.f32 %v1346_v5, %v144_v4 }
  0xf1   :  { %v1425_v6 = vpop.f32.mrf.mxu0 }
  0xf2   :  { %v171_v12 = vpack.c.bf16 %v145_v8, %v145_v8 }
  0xf3   :  { %v147_v7 = vpop.f32.mrf.mxu0 }
  0xf4   :  { %v148_v9 = vadd.f32 %v1346_v5, %v147_v7 }
  0xf5   :  { %v1426_v10 = vpop.f32.mrf.mxu0 }
  0xf6   :  { %v1571_v11 = vpack.i.bf16 %v148_v9, %v145_v8  ;;  %v172_v13 = vpack.c.bf16 %v148_v9, %v148_v9 }
  0xf8   :  { %1572 = vrot.lane.b32.xlu1 %v1571_v11, %s1713_s17  ;;  %1562 = vrot.lane.b32.xlu0 %v1571_v11, %s1714_s18 }
  0xfc   :  { %180 = vrot.lane.b32.xlu1 %v171_v12, %s1715_s19  ;;  %1567 = vrot.lane.b32.xlu0 %v1571_v11, %s1716_s20 }
 0x100   :  { %230 = vrot.lane.b32.xlu0 %v172_v13, %s1715_s19 }
 0x16a   :  { %v1573_v14 = vpop.permute.xlu1 %1572  ;;  %v1563_v15 = vpop.permute.xlu0 %1562 }
 0x16b   :  { %v1565_v16 = vunpack.i.h.bf16 %v1563_v15  ;;  %v1564_v17 = vunpack.i.l.bf16 %v1563_v15  ;;  %v1574_v25 = vunpack.i.l.bf16 %v1573_v14  ;;  %v1575_v28 = vunpack.i.h.bf16 %v1573_v14 }
 0x16d   :  { %v1794_v18 = vpack.c.bf16 %v1565_v16, %v1565_v16  ;;  %v1796_v19 = vpack.c.bf16 %v1564_v17, %v1564_v17  ;;  %v1813_v31 = vpack.c.bf16 %v1574_v25, %v1574_v25  ;;  %v1816_v32 = vpack.c.bf16 %v1575_v28, %v1575_v28 }
 0x16e   :  { %v181_v20 = vpop.permute.xlu1 %180  ;;  %v1568_v21 = vpop.permute.xlu0 %1567 }
 0x16f   :  { %v1570_v22 = vunpack.i.h.bf16 %v1568_v21  ;;  %v1569_v23 = vunpack.i.l.bf16 %v1568_v21  ;;  %279 = vrot.lane.b32.xlu1 %v1796_v19, %s1715_s19  ;;  %328 = vrot.lane.b32.xlu0 %v1794_v18, %s1715_s19  ;;  %v187_v24 = vsel %vm182_vm2, %v181_v20, 0 }
 0x170   :  { %1428 = vmatpush3.bf16.xpose.msra.mxu1 %v187_v24 }
 0x171   :  { %v1803_v26 = vpack.c.bf16 %v1570_v22, %v1570_v22  ;;  %v1805_v27 = vpack.c.bf16 %v1569_v23, %v1569_v23  ;;  %1439 = vmatprep.subr.bf16.mxu1 %v1711_v0 }
 0x172   :  { %v231_v29 = vpop.permute.xlu0 %230 }
 0x173   :  { %v236_v30 = vsel %vm182_vm2, %v231_v29, 0  ;;  %377 = vrot.lane.b32.xlu1 %v1805_v27, %s1715_s19  ;;  %426 = vrot.lane.b32.xlu0 %v1803_v26, %s1715_s19 }
 0x174   :  { %1434 = vmatpush3.bf16.xpose.msra.mxu0 %v236_v30 }
 0x175   :  { %1445 = vmatprep.subr.bf16.mxu0 %v1711_v0 }
 0x177   :  { %1430 = vmatmul.mubr.msk.bf16.vlgmr.msra.gmra.mxu1 %vm182_vm2, %v171_v12  ;;  %475 = vrot.lane.b32.xlu1 %v1813_v31, %s1715_s19 }
 0x178   :  { %524 = vrot.lane.b32.xlu0 %v1816_v32, %s1715_s19  ;;  %1441 = vmatprep.mubr.msk.bf16.mxu1 %vm1712_vm0, %v1711_v0 }
 0x17b   :  { %717 = vrot.lane.b32.xlu1 %v172_v13, %s1708_s29  ;;  %1436 = vmatmul.mubr.msk.bf16.vlgmr.msra.gmra.mxu0 %vm182_vm2, %v172_v13 }
 0x17c   :  { %668 = vrot.lane.b32.xlu0 %v171_v12, %s1708_s29  ;;  %1447 = vmatprep.mubr.msk.bf16.mxu0 %vm1712_vm0, %v1711_v0 }
 0x1e1   :  { %v280_v33 = vpop.permute.xlu1 %279  ;;  %v329_v34 = vpop.permute.xlu0 %328 }
 0x1e2   :  { %v285_v35 = vsel %vm182_vm2, %v280_v33, 0  ;;  %v334_v36 = vsel %vm182_vm2, %v329_v34, 0 }
 0x1e3   :  { %1440 = vmatpush3.bf16.xpose.msra.mxu1 %v285_v35  ;;  %1446 = vmatpush3.bf16.xpose.msra.mxu0 %v334_v36 }
 0x1e4   :  { %1451 = vmatprep.subr.bf16.mxu1 %v1711_v0  ;;  %1457 = vmatprep.subr.bf16.mxu0 %v1711_v0 }
 0x1e5   :  { %v378_v37 = vpop.permute.xlu1 %377  ;;  %v427_v38 = vpop.permute.xlu0 %426 }
 0x1e6   :  { %v383_v39 = vsel %vm182_vm2, %v378_v37, 0  ;;  %v432_v40 = vsel %vm182_vm2, %v427_v38, 0 }
 0x1e9   :  { %v476_v41 = vpop.permute.xlu1 %475 }
 0x1ea   :  { %1442 = vmatmul.mubr.msk.bf16.vlgmr.msra.gmra.mxu1 %vm182_vm2, %v1796_v19  ;;  %1448 = vmatmul.mubr.msk.bf16.vlgmr.msra.gmra.mxu0 %vm182_vm2, %v1794_v18  ;;  %v525_v42 = vpop.permute.xlu0 %524  ;;  %v481_v43 = vsel %vm182_vm2, %v476_v41, 0 }
 0x1eb   :  { %1452 = vmatpush3.bf16.xpose.msra.mxu1 %v383_v39  ;;  %1458 = vmatpush3.bf16.xpose.msra.mxu0 %v432_v40  ;;  %v530_v44 = vsel %vm182_vm2, %v525_v42, 0 }
 0x1ec   :  { %1453 = vmatprep.mubr.msk.bf16.mxu1 %vm1712_vm0, %v1711_v0  ;;  %1459 = vmatprep.mubr.msk.bf16.mxu0 %vm1712_vm0, %v1711_v0 }
 0x1ed   :  { %1463 = vmatprep.subr.bf16.mxu1 %v1711_v0  ;;  %1469 = vmatprep.subr.bf16.mxu0 %v1711_v0  ;;  %v718_v45 = vpop.permute.xlu1 %717 }
 0x1ee   :  { %v669_v46 = vpop.permute.xlu0 %668  ;;  %v723_v47 = vsel %vm673_vm3, %v718_v45, 0 }
 0x1ef   :  { %v675_v48 = vsel %vm673_vm3, %v669_v46, 0 }
 0x1f2   :  { %1454 = vmatmul.mubr.msk.bf16.vlgmr.msra.gmra.mxu1 %vm182_vm2, %v1805_v27  ;;  %1460 = vmatmul.mubr.msk.bf16.vlgmr.msra.gmra.mxu0 %vm182_vm2, %v1803_v26 }
 0x1f3   :  { %1464 = vmatpush3.bf16.xpose.msra.mxu1 %v481_v43  ;;  %1470 = vmatpush3.bf16.xpose.msra.mxu0 %v530_v44 }
 0x1f4   :  { %1465 = vmatprep.mubr.msk.bf16.mxu1 %vm1712_vm0, %v1711_v0  ;;  %1471 = vmatprep.mubr.msk.bf16.mxu0 %vm1712_vm0, %v1711_v0 }
 0x1f5   :  { %1475 = vmatprep.subr.bf16.mxu1 %v1711_v0  ;;  %1481 = vmatprep.subr.bf16.mxu0 %v1711_v0 }
 0x1fa   :  { %1466 = vmatmul.mubr.msk.bf16.vlgmr.msra.gmra.mxu1 %vm182_vm2, %v1813_v31  ;;  %1472 = vmatmul.mubr.msk.bf16.vlgmr.msra.gmra.mxu0 %vm182_vm2, %v1816_v32 }
 0x1fb   :  { %1476 = vmatpush3.bf16.msra.mxu1 %v675_v48  ;;  %1482 = vmatpush3.bf16.msra.mxu0 %v723_v47 }
 0x1fc   :  { %1477 = vmatprep.mubr.msk.bf16.mxu1 %vm1712_vm0, %v1711_v0  ;;  %1483 = vmatprep.mubr.msk.bf16.mxu0 %vm1712_vm0, %v1711_v0 }
 0x1fd   :  { %1487 = vmatprep.subr.bf16.mxu1 %v1711_v0  ;;  %1493 = vmatprep.subr.bf16.mxu0 %v1711_v0 }
 0x237   :  { %v223_v49 = vpop.f32.mrf.mxu1 }
 0x238   :  { %v572_v50 = vsel %vm182_vm2, %v223_v49, -inf }
 0x239   :  { %v1431_v51 = vpop.f32.mrf.mxu1  ;;  %573 = vmax.xlane.f32.xlu1 %v572_v50 }
 0x23b   :  { %v226_v52 = vpop.f32.mrf.mxu1  ;;  %v272_v53 = vpop.f32.mrf.mxu0 }
 0x23c   :  { %v575_v54 = vsel %vm182_vm2, %v272_v53, -inf }
 0x23d   :  { %v1432_v55 = vpop.f32.mrf.mxu1  ;;  %576 = vmax.xlane.f32.xlu0 %v575_v54  ;;  %v1437_v56 = vpop.f32.mrf.mxu0 }
 0x23f   :  { %v275_v57 = vpop.f32.mrf.mxu0 }
 0x241   :  { %v1438_v58 = vpop.f32.mrf.mxu0 }
 0x2aa   :  { %v321_v59 = vpop.f32.mrf.mxu1  ;;  %v370_v60 = vpop.f32.mrf.mxu0 }
 0x2ab   :  { %v578_v61 = vsel %vm182_vm2, %v321_v59, -inf  ;;  %v581_v62 = vsel %vm182_vm2, %v370_v60, -inf }
 0x2ac   :  { %v1443_v63 = vpop.f32.mrf.mxu1  ;;  %579 = vmax.xlane.f32.xlu0 %v578_v61  ;;  %582 = vmax.xlane.f32.xlu1 %v581_v62  ;;  %v1449_v1 = vpop.f32.mrf.mxu0 }
 0x2ae   :  { %v324_v2 = vpop.f32.mrf.mxu1  ;;  %v373_v4 = vpop.f32.mrf.mxu0 }
 0x2b0   :  { %v1444_v5 = vpop.f32.mrf.mxu1  ;;  %v1450_v6 = vpop.f32.mrf.mxu0 }
 0x2b2   :  { %v1874_v7 = vpop.f32.mrf.mxu1  ;;  %v468_v8 = vpop.f32.mrf.mxu0 }
 0x2b3   :  { %v584_v9 = vsel %vm182_vm2, %v1874_v7, -inf  ;;  %v587_v10 = vsel %vm182_vm2, %v468_v8, -inf }
 0x2b4   :  { %v1455_v11 = vpop.f32.mrf.mxu1  ;;  %585 = vmax.xlane.f32.xlu0 %v584_v9  ;;  %588 = vmax.xlane.f32.xlu1 %v587_v10  ;;  %v1461_v12 = vpop.f32.mrf.mxu0 }
 0x2b6   :  { %v422_v13 = vpop.f32.mrf.mxu1  ;;  %v471_v14 = vpop.f32.mrf.mxu0 }
 0x2b8   :  { %v1456_v15 = vpop.f32.mrf.mxu1  ;;  %v1462_v16 = vpop.f32.mrf.mxu0 }
 0x2ba   :  { %v1879_v17 = vpop.f32.mrf.mxu1  ;;  %v566_v20 = vpop.f32.mrf.mxu0 }
 0x2bb   :  { %v590_v21 = vsel %vm182_vm2, %v1879_v17, -inf  ;;  %v593_v22 = vsel %vm182_vm2, %v566_v20, -inf }
 0x2bc   :  { %v1467_v23 = vpop.f32.mrf.mxu1  ;;  %591 = vmax.xlane.f32.xlu0 %v590_v21  ;;  %594 = vmax.xlane.f32.xlu1 %v593_v22  ;;  %v1473_v24 = vpop.f32.mrf.mxu0 }
 0x2be   :  { %v520_v25 = vpop.f32.mrf.mxu1  ;;  %v569_v28 = vpop.f32.mrf.mxu0 }
 0x2c0   :  { %v1468_v29 = vpop.f32.mrf.mxu1  ;;  %v1474_v30 = vpop.f32.mrf.mxu0 }
 0x2c2   :  { %v574_v33 = vpop.xlane.xlu1 %573 }
 0x2c3   :  { %v596_v35 = vsub.f32 %v223_v49, %v574_v33 }
 0x2c5   :  { %v604_v37 = vmul.f32 1.442695, %v596_v35 }
 0x2c6   :  { %v577_v34 = vpop.xlane.xlu0 %576 }
 0x2c7   :  { %v597_v36 = vsub.f32 %v272_v53, %v577_v34  ;;  %1580 = vpow2.f32 %v604_v37 }
 0x2c9   :  { %v606_v38 = vmul.f32 1.442695, %v597_v36 }
 0x2cb   :  { %1582 = vpow2.f32 %v606_v38 }
 0x2cd   :  { %765 = vrot.lane.b32.xlu1 %v1796_v19, %s1708_s29 }
 0x2d2   :  { %813 = vrot.lane.b32.xlu0 %v1794_v18, %s1708_s29 }
 0x2d4   :  { %v1581_v39 = vpop.eup %1580 }
 0x2d5   :  { %v620_v41 = vsel %vm182_vm2, %v1581_v39, 0.0 }
 0x2d8   :  { %v1583_v40 = vpop.eup %1582 }
 0x2d9   :  { %v623_v42 = vsel %vm182_vm2, %v1583_v40, 0.0 }
 0x2f1   :  { %621 = vadd.xlane.f32.xlu0 %v620_v41  ;;  %624 = vadd.xlane.f32.xlu1 %v623_v42 }
 0x302   :  { %861 = vrot.lane.b32.xlu1 %v1805_v27, %s1708_s29 }
 0x335   :  { %v580_v18 = vpop.xlane.xlu0 %579  ;;  %v583_v19 = vpop.xlane.xlu1 %582 }
 0x336   :  { %v598_v43 = vsub.f32 %v321_v59, %v580_v18  ;;  %v599_v44 = vsub.f32 %v370_v60, %v583_v19 }
 0x338   :  { %v608_v45 = vmul.f32 1.442695, %v598_v43  ;;  %v610_v46 = vmul.f32 1.442695, %v599_v44 }
 0x33a   :  { %1584 = vpow2.f32 %v608_v45 }
 0x33b   :  { %1586 = vpow2.f32 %v610_v46 }
 0x33d   :  { %v589_v47 = vpop.xlane.xlu1 %588  ;;  %v586_v60 = vpop.xlane.xlu0 %585 }
 0x33e   :  { %v601_v48 = vsub.f32 %v468_v8, %v589_v47  ;;  %v600_v61 = vsub.f32 %v1874_v7, %v586_v60 }
 0x340   :  { %v614_v49 = vmul.f32 1.442695, %v601_v48  ;;  %v612_v63 = vmul.f32 1.442695, %v600_v61 }
 0x342   :  { %1588 = vpow2.f32 %v614_v49 }
 0x345   :  { %v595_v50 = vpop.xlane.xlu1 %594  ;;  %v592_v62 = vpop.xlane.xlu0 %591 }
 0x346   :  { %v603_v51 = vsub.f32 %v566_v20, %v595_v50  ;;  %v602_v1 = vsub.f32 %v1879_v17, %v592_v62 }
 0x347   :  { %v1585_v52 = vpop.eup %1584 }
 0x348   :  { %v1587_v53 = vpop.eup %1586  ;;  %v618_v54 = vmul.f32 1.442695, %v603_v51  ;;  %v626_v55 = vsel %vm182_vm2, %v1585_v52, 0.0  ;;  %v616_v2 = vmul.f32 1.442695, %v602_v1 }
 0x349   :  { %627 = vadd.xlane.f32.xlu0 %v626_v55  ;;  %v629_v27 = vsel %vm182_vm2, %v1587_v53, 0.0  ;;  %v814_v4 = vpop.permute.xlu0 %813  ;;  %v766_v5 = vpop.permute.xlu1 %765  ;;  %v76_v55 = vld [vmem:[#allocation7 + $0x4] sm:$0xf] }
 0x34a   :  { %630 = vadd.xlane.f32.xlu1 %v629_v27  ;;  %1590 = vpow2.f32 %v618_v54  ;;  %v771_v16 = vsel %vm673_vm3, %v766_v5, 0  ;;  %v819_v17 = vsel %vm673_vm3, %v814_v4, 0  ;;  %v1108_v27 = vsel %vm673_vm3, %v76_v55, 0  ;;  %v78_v5 = vld [vmem:[#allocation7 + $0xc] sm:$0xf] }
 0x34b   :  { %1592 = vpow2.f32 %v612_v63  ;;  %v1371_v55 = vld [vmem:[%s2004_s4] ss:$0 sm:$0xff] }
 0x34c   :  { %1594 = vpow2.f32 %v616_v2  ;;  %v77_v2 = vld [vmem:[#allocation7 + $0x8] sm:$0xf] }
 0x34d   :  { %v1155_v4 = vsel %vm673_vm3, %v77_v2, 0 }
 0x34f   :  { %v1894_v56 = vpop.eup %1588 }
 0x350   :  { %v635_v57 = vsel %vm182_vm2, %v1894_v56, 0.0 }
 0x351   :  { %636 = vadd.xlane.f32.xlu1 %v635_v57 }
 0x357   :  { %v1898_v58 = vpop.eup %1590 }
 0x358   :  { %v641_v59 = vsel %vm182_vm2, %v1898_v58, 0.0  ;;  %v1908_v6 = vpop.eup %1592 }
 0x359   :  { %642 = vadd.xlane.f32.xlu1 %v641_v59  ;;  %v1912_v7 = vpop.eup %1594 }
 0x35f   :  { %909 = vrot.lane.b32.xlu0 %v1803_v26, %s1708_s29  ;;  %v632_v26 = vsel %vm182_vm2, %v1908_v6, 0.0 }
 0x36a   :  { %957 = vrot.lane.b32.xlu1 %v1813_v31, %s1708_s29  ;;  %v638_v31 = vsel %vm182_vm2, %v1912_v7, 0.0 }
 0x37a   :  { %v622_v8 = vpop.xlane.xlu0 %621  ;;  %v625_v9 = vpop.xlane.xlu1 %624 }
 0x37b   :  { %1596 = vrcp.f32 %v622_v8 }
 0x37c   :  { %1598 = vrcp.f32 %v625_v9 }
 0x37e   :  { %633 = vadd.xlane.f32.xlu0 %v632_v26  ;;  %v862_v20 = vpop.permute.xlu1 %861 }
 0x37f   :  { %v867_v35 = vsel %vm673_vm3, %v862_v20, 0 }
 0x382   :  { %639 = vadd.xlane.f32.xlu0 %v638_v31 }
 0x388   :  { %v1597_v10 = vpop.eup %1596 }
 0x389   :  { %v1599_v11 = vpop.eup %1598  ;;  %v652_v12 = vmul.f32 %v1597_v10, %v1581_v39 }
 0x38a   :  { %v653_v13 = vmul.f32 %v1599_v11, %v1583_v40 }
 0x38b   :  { %v660_v14 = vpack.c.bf16 %v652_v12, %v652_v12 }
 0x38c   :  { %v661_v15 = vpack.c.bf16 %v653_v13, %v653_v13 }
 0x38d   :  { %1478 = vmatmul.mubr.msk.bf16.vlgmr.msra.gmra.mxu1 %vm182_vm2, %v660_v14 }
 0x38e   :  { %1484 = vmatmul.mubr.msk.bf16.vlgmr.msra.gmra.mxu0 %vm182_vm2, %v661_v15  ;;  %1488 = vmatpush3.bf16.msra.mxu1 %v771_v16 }
 0x38f   :  { %1494 = vmatpush3.bf16.msra.mxu0 %v819_v17  ;;  %1489 = vmatprep.mubr.msk.bf16.mxu1 %vm1712_vm0, %v1711_v0 }
 0x390   :  { %1495 = vmatprep.mubr.msk.bf16.mxu0 %vm1712_vm0, %v1711_v0  ;;  %1499 = vmatprep.subr.bf16.mxu1 %v1711_v0 }
 0x391   :  { %1505 = vmatprep.subr.bf16.mxu0 %v1711_v0 }
 0x398   :  { %1005 = vrot.lane.b32.xlu0 %v1816_v32, %s1708_s29 }
 0x3d2   :  { %v628_v21 = vpop.xlane.xlu0 %627 }
 0x3d3   :  { %1600 = vrcp.f32 %v628_v21  ;;  %v631_v22 = vpop.xlane.xlu1 %630 }
 0x3d4   :  { %1602 = vrcp.f32 %v631_v22 }
 0x3d6   :  { %v910_v30 = vpop.permute.xlu0 %909 }
 0x3d7   :  { %v915_v32 = vsel %vm673_vm3, %v910_v30, 0 }
 0x3da   :  { %v637_v23 = vpop.xlane.xlu1 %636 }
 0x3db   :  { %1604 = vrcp.f32 %v637_v23 }
 0x3e0   :  { %v1601_v24 = vpop.eup %1600 }
 0x3e1   :  { %v1603_v25 = vpop.eup %1602  ;;  %v654_v28 = vmul.f32 %v1601_v24, %v1585_v52  ;;  %v75_v52 = vld [vmem:[#allocation7] sm:$0xf] }
 0x3e2   :  { %v655_v29 = vmul.f32 %v1603_v25, %v1587_v53  ;;  %v643_v39 = vpop.xlane.xlu1 %642  ;;  %v1061_v54 = vsel %vm673_vm3, %v75_v52, 0 }
 0x3e3   :  { %v662_v33 = vpack.c.bf16 %v654_v28, %v654_v28  ;;  %1606 = vrcp.f32 %v643_v39 }
 0x3e4   :  { %v663_v34 = vpack.c.bf16 %v655_v29, %v655_v29 }
 0x3e5   :  { %1490 = vmatmul.mubr.msk.bf16.vlgmr.msra.gmra.mxu1 %vm182_vm2, %v662_v33 }
 0x3e6   :  { %1496 = vmatmul.mubr.msk.bf16.vlgmr.msra.gmra.mxu0 %vm182_vm2, %v663_v34  ;;  %1500 = vmatpush3.bf16.msra.mxu1 %v867_v35  ;;  %v958_v47 = vpop.permute.xlu1 %957 }
 0x3e7   :  { %1506 = vmatpush3.bf16.msra.mxu0 %v915_v32  ;;  %1507 = vmatprep.mubr.msk.bf16.mxu0 %vm1712_vm0, %v1711_v0  ;;  %v963_v50 = vsel %vm673_vm3, %v958_v47, 0 }
 0x3e8   :  { %1517 = vmatprep.subr.bf16.mxu0 %v1711_v0  ;;  %1501 = vmatprep.mubr.msk.bf16.mxu1 %vm1712_vm0, %v1711_v0  ;;  %v1605_v36 = vpop.eup %1604 }
 0x3e9   :  { %1511 = vmatprep.subr.bf16.mxu1 %v1711_v0  ;;  %v657_v37 = vmul.f32 %v1605_v36, %v1894_v56 }
 0x3eb   :  { %v665_v38 = vpack.c.bf16 %v657_v37, %v657_v37 }
 0x3ee   :  { %1508 = vmatmul.mubr.msk.bf16.vlgmr.msra.gmra.mxu0 %vm182_vm2, %v665_v38 }
 0x3ef   :  { %1519 = vmatprep.mubr.msk.bf16.mxu0 %vm1712_vm0, %v1711_v0 }
 0x3f0   :  { %v1607_v41 = vpop.eup %1606 }
 0x3f1   :  { %v659_v18 = vmul.f32 %v1607_v41, %v1898_v58 }
 0x3f3   :  { %v667_v44 = vpack.c.bf16 %v659_v18, %v659_v18 }
 0x407   :  { %v634_v40 = vpop.xlane.xlu0 %633 }
 0x408   :  { %1608 = vrcp.f32 %v634_v40 }
 0x40b   :  { %v640_v42 = vpop.xlane.xlu0 %639 }
 0x40c   :  { %1610 = vrcp.f32 %v640_v42 }
 0x40f   :  { %v1006_v19 = vpop.permute.xlu0 %1005 }
 0x410   :  { %v1011_v43 = vsel %vm673_vm3, %v1006_v19, 0 }
 0x411   :  { %1518 = vmatpush3.bf16.msra.mxu0 %v1011_v43 }
 0x412   :  { %1529 = vmatprep.subr.bf16.mxu0 %v1711_v0 }
 0x414   :  { %1520 = vmatmul.mubr.msk.bf16.vlgmr.msra.gmra.mxu0 %vm182_vm2, %v667_v44 }
 0x415   :  { %v1609_v45 = vpop.eup %1608  ;;  %1531 = vmatprep.mubr.msk.bf16.mxu0 %vm1712_vm0, %v1711_v0  ;;  %1530 = vmatpush3.bf16.msra.mxu0 %v1108_v27 }
 0x416   :  { %v656_v46 = vmul.f32 %v1609_v45, %v1908_v6  ;;  %1541 = vmatprep.subr.bf16.mxu0 %v1711_v0 }
 0x418   :  { %v664_v48 = vpack.c.bf16 %v656_v46, %v656_v46 }
 0x419   :  { %v1611_v49 = vpop.eup %1610 }
 0x41a   :  { %1502 = vmatmul.mubr.msk.bf16.vlgmr.msra.gmra.mxu1 %vm182_vm2, %v664_v48  ;;  %v658_v51 = vmul.f32 %v1611_v49, %v1912_v7  ;;  %v1202_v7 = vsel %vm673_vm3, %v78_v5, 0  ;;  %v1268_v5 = vunpack.c.h.bf16 %v1781_v3 }
 0x41b   :  { %1512 = vmatpush3.bf16.msra.mxu1 %v963_v50  ;;  %1513 = vmatprep.mubr.msk.bf16.mxu1 %vm1712_vm0, %v1711_v0 }
 0x41c   :  { %1523 = vmatprep.subr.bf16.mxu1 %v1711_v0  ;;  %v666_v53 = vpack.c.bf16 %v658_v51, %v658_v51 }
 0x422   :  { %1514 = vmatmul.mubr.msk.bf16.vlgmr.msra.gmra.mxu1 %vm182_vm2, %v666_v53 }
 0x423   :  { %1524 = vmatpush3.bf16.msra.mxu1 %v1061_v54  ;;  %1525 = vmatprep.mubr.msk.bf16.mxu1 %vm1712_vm0, %v1711_v0 }
 0x424   :  { %1535 = vmatprep.subr.bf16.mxu1 %v1711_v0 }
 0x44d   :  { %v711_v56 = vpop.f32.mrf.mxu1 }
 0x44e   :  { %v759_v57 = vpop.f32.mrf.mxu0 }
 0x44f   :  { %v1053_v58 = vpack.c.bf16 %v759_v57, %v711_v56  ;;  %v1479_v59 = vpop.f32.mrf.mxu1 }
 0x450   :  { %v1485_v60 = vpop.f32.mrf.mxu0  ;;  %v1267_v59 = vunpack.c.l.bf16 %v1781_v3 }
 0x451   :  { %1526 = vmatmul.mubr.msk.bf16.vlgmr.msra.gmra.mxu1 %vm182_vm2, %v1053_v58  ;;  %v714_v61 = vpop.f32.mrf.mxu1 }
 0x452   :  { %v762_v62 = vpop.f32.mrf.mxu0  ;;  %1537 = vmatprep.mubr.msk.bf16.mxu1 %vm1712_vm0, %v1711_v0  ;;  %1536 = vmatpush3.bf16.msra.mxu1 %v1155_v4 }
 0x453   :  { %v1480_v63 = vpop.f32.mrf.mxu1 }
 0x454   :  { %v1486_v1 = vpop.f32.mrf.mxu0 }
 0x4a5   :  { %v807_v6 = vpop.f32.mrf.mxu1 }
 0x4a6   :  { %v855_v8 = vpop.f32.mrf.mxu0 }
 0x4a7   :  { %v1054_v9 = vpack.c.bf16 %v855_v8, %v807_v6  ;;  %v1491_v26 = vpop.f32.mrf.mxu1 }
 0x4a8   :  { %v1497_v31 = vpop.f32.mrf.mxu0 }
 0x4a9   :  { %1532 = vmatmul.mubr.msk.bf16.vlgmr.msra.gmra.mxu0 %vm182_vm2, %v1054_v9  ;;  %v810_v10 = vpop.f32.mrf.mxu1 }
 0x4aa   :  { %v858_v11 = vpop.f32.mrf.mxu0  ;;  %1542 = vmatpush3.bf16.msra.mxu0 %v1202_v7  ;;  %1543 = vmatprep.mubr.msk.bf16.mxu0 %vm1712_vm0, %v1711_v0 }
 0x4ab   :  { %v1492_v12 = vpop.f32.mrf.mxu1 }
 0x4ac   :  { %v1498_v13 = vpop.f32.mrf.mxu0 }
 0x4ae   :  { %v951_v14 = vpop.f32.mrf.mxu0 }
 0x4b0   :  { %v1509_v15 = vpop.f32.mrf.mxu0 }
 0x4b2   :  { %v954_v16 = vpop.f32.mrf.mxu0 }
 0x4b4   :  { %v1510_v17 = vpop.f32.mrf.mxu0 }
 0x4d4   :  { %v1047_v20 = vpop.f32.mrf.mxu0 }
 0x4d6   :  { %v1521_v21 = vpop.f32.mrf.mxu0 }
 0x4d8   :  { %v1050_v22 = vpop.f32.mrf.mxu0 }
 0x4da   :  { %v903_v23 = vpop.f32.mrf.mxu1  ;;  %v1522_v24 = vpop.f32.mrf.mxu0 }
 0x4db   :  { %v1055_v25 = vpack.c.bf16 %v951_v14, %v903_v23 }
 0x4dc   :  { %v1503_v28 = vpop.f32.mrf.mxu1 }
 0x4dd   :  { %1538 = vmatmul.mubr.msk.bf16.vlgmr.msra.gmra.mxu1 %vm182_vm2, %v1055_v25  ;;  %v1372_v28 = vld [vmem:[%s2005_s5] ss:$0 sm:$0xff]  ;;  %s1717_s5 = smov [#allocation8]  }
 0x4de   :  { %v906_v29 = vpop.f32.mrf.mxu1  ;;  %s1333_s25 = sshll.u32 %s1717_s5, 4  ;;  %s1334_s25 = int_to_ptr.vmem [resolvable:$true] %s1333_s25 }
 0x4df   :  { %p1685_p2 = scmp.lt.s32.totalorder %s1334_s25, %s1334_s25 }
 0x4e0   :  { %v1504_v30 = vpop.f32.mrf.mxu1 }
 0x4e1   :  { %v1373_v30 = vld [vmem:[%s2006_s6] ss:$0 sm:$0xff]  ;;  %s1680_s6 = scalar_lea.vmem %s1334_s25, 256 }
 0x4e2   :  { %v999_v33 = vpop.f32.mrf.mxu1  ;;  %p1681_p1 = scmp.ne.s32.totalorder %s1334_s25, %s1680_s6  ;;  %p1686_p3 = scmp.lt.s32.totalorder %s1680_s6, %s1680_s6 }
 0x4e3   :  { %v1056_v34 = vpack.c.bf16 %v1047_v20, %v999_v33 }
 0x4e4   :  { %v1515_v0 = vpop.f32.mrf.mxu1  ;;  %p1687_p4 = por %p1686_p3, %p1685_p2 }
 0x4e5   :  { %1544 = vmatmul.mubr.msk.bf16.vlgmr.msra.gmra.mxu0 %vm182_vm2, %v1056_v34 }
 0x4e6   :  { %v1002_v35 = vpop.f32.mrf.mxu1  ;;  %p1688_p5 = pnand %p1687_p4, %p1681_p1 }
 0x4e8   :  { %v1516_v32 = vpop.f32.mrf.mxu1 }
 0x511   :  { %v1097_v36 = vpop.f32.mrf.mxu1 }
 0x512   :  { %v1245_v46 = vsel %vm106_vm1, %v1097_v36, 0.0 }
 0x513   :  { %v1527_v37 = vpop.f32.mrf.mxu1 }
 0x515   :  { %v1100_v38 = vpop.f32.mrf.mxu1 }
 0x516   :  { %v1252_v53 = vsel %vm106_vm1, %v1100_v38, 0.0 }
 0x517   :  { %v1528_v39 = vpop.f32.mrf.mxu1 }
 0x569   :  { %v1144_v40 = vpop.f32.mrf.mxu0 }
 0x56a   :  { %v1246_v44 = vsel %vm106_vm1, %v1144_v40, 0.0 }
 0x56b   :  { %v1533_v41 = vpop.f32.mrf.mxu0  ;;  %v1247_v48 = vadd.f32 %v1246_v44, %v1245_v46 }
 0x56d   :  { %v1147_v42 = vpop.f32.mrf.mxu0 }
 0x56e   :  { %v1253_v50 = vsel %vm106_vm1, %v1147_v42, 0.0 }
 0x56f   :  { %v1534_v18 = vpop.f32.mrf.mxu0  ;;  %v1254_v56 = vadd.f32 %v1253_v50, %v1252_v53 }
 0x59d   :  { %v1191_v19 = vpop.f32.mrf.mxu1 }
 0x59e   :  { %v1248_v47 = vsel %vm106_vm1, %v1191_v19, 0.0 }
 0x59f   :  { %v1539_v43 = vpop.f32.mrf.mxu1  ;;  %v1249_v51 = vadd.f32 %v1248_v47, %v1247_v48 }
 0x5a1   :  { %v1194_v45 = vpop.f32.mrf.mxu1 }
 0x5a2   :  { %v1255_v54 = vsel %vm106_vm1, %v1194_v45, 0.0 }
 0x5a3   :  { %v1540_v49 = vpop.f32.mrf.mxu1  ;;  %v1256_v60 = vadd.f32 %v1255_v54, %v1254_v56 }
 0x5a5   :  { %v1238_v52 = vpop.f32.mrf.mxu0 }
 0x5a6   :  { %v1250_v27 = vsel %vm106_vm1, %v1238_v52, 0.0 }
 0x5a7   :  { %v1251_v57 = vadd.f32 %v1250_v27, %v1249_v51  ;;  %v1545_v58 = vpop.f32.mrf.mxu0 }
 0x5a9   :  { %v1265_v61 = vadd.f32 %v1371_v55, %v1251_v57  ;;  %v1241_v62 = vpop.f32.mrf.mxu0 }
 0x5aa   :  { %v1257_v63 = vsel %vm106_vm1, %v1241_v62, 0.0 }
 0x5ab   :  { %v1258_v1 = vadd.f32 %v1257_v63, %v1256_v60  ;;  %v1546_v2 = vpop.f32.mrf.mxu0  ;;  %v1269_v4 = vadd.f32 %v1267_v59, %v1265_v61 }
 0x5ad   :  { %v1266_v6 = vadd.f32 %v1371_v55, %v1258_v1  ;;  %v1271_v8 = vsel %vm106_vm1, %v1269_v4, 0.0 }
 0x5ae   :  { %1272 = vadd.xlane.f32.xlu1 %v1271_v8 }
 0x5af   :  { %v1270_v9 = vadd.f32 %v1268_v5, %v1266_v6 }
 0x5b1   :  { %v1274_v26 = vsel %vm106_vm1, %v1270_v9, 0.0 }
 0x5b2   :  { %1275 = vadd.xlane.f32.xlu0 %v1274_v26 }
 0x637   :  { %v1273_v7 = vpop.xlane.xlu1 %1272 }
 0x638   :  { %v1278_v31 = vmul.f32 0.03125, %v1273_v7 }
 0x63a   :  { %v1280_v10 = vsub.f32 %v1269_v4, %v1278_v31 }
 0x63b   :  { %v1276_v11 = vpop.xlane.xlu0 %1275 }
 0x63c   :  { %v1279_v12 = vmul.f32 0.03125, %v1276_v11  ;;  %v1282_v13 = vmul.f32 %v1280_v10, %v1280_v10 }
 0x63e   :  { %v1281_v14 = vsub.f32 %v1270_v9, %v1279_v12  ;;  %v1284_v15 = vsel %vm106_vm1, %v1282_v13, 0.0 }
 0x63f   :  { %1285 = vadd.xlane.f32.xlu0 %v1284_v15 }
 0x640   :  { %v1283_v16 = vmul.f32 %v1281_v14, %v1281_v14 }
 0x642   :  { %v1287_v3 = vsel %vm106_vm1, %v1283_v16, 0.0 }
 0x643   :  { %1288 = vadd.xlane.f32.xlu1 %v1287_v3 }
 0x6c8   :  { %v1286_v17 = vpop.xlane.xlu0 %1285 }
 0x6c9   :  { %v1290_v20 = vmul.f32 0.03125, %v1286_v17 }
 0x6cb   :  { %v1292_v21 = vadd.f32 1e-05, %v1290_v20 }
 0x6cc   :  { %v1289_v22 = vpop.xlane.xlu1 %1288 }
 0x6cd   :  { %1612 = vrsqrt.f32 %v1292_v21  ;;  %v1291_v23 = vmul.f32 0.03125, %v1289_v22 }
 0x6cf   :  { %v1293_v24 = vadd.f32 1e-05, %v1291_v23 }
 0x6d1   :  { %1614 = vrsqrt.f32 %v1293_v24 }
 0x6da   :  { %v1613_v25 = vpop.eup %1612 }
 0x6db   :  { %v1296_v29 = vmul.f32 %v1613_v25, %v1280_v10 }
 0x6dd   :  { %v1304_v33 = vmul.f32 %v1372_v28, %v1296_v29 }
 0x6de   :  { %v1615_v34 = vpop.eup %1614 }
 0x6df   :  { %v1297_v0 = vmul.f32 %v1615_v34, %v1281_v14  ;;  %v1312_v35 = vadd.f32 %v1373_v30, %v1304_v33 }
 0x6e1   :  { %v1305_v32 = vmul.f32 %v1372_v28, %v1297_v0  ;;  %v1316_v36 = vmin.f32 %v1312_v35, 0.0  ;;  %vm1314_vm4 = vcmp.gt.f32.partialorder %v1312_v35, 0.0 }
 0x6e3   :  { %v1313_v37 = vadd.f32 %v1373_v30, %v1305_v32  ;;  %v1318_v38 = vmul.f32 1.442695, %v1316_v36 }
 0x6e5   :  { %v1317_v39 = vmin.f32 %v1313_v37, 0.0  ;;  %1616 = vpow2.f32 %v1318_v38  ;;  %vm1315_vm5 = vcmp.gt.f32.partialorder %v1313_v37, 0.0 }
 0x6e7   :  { %v1320_v40 = vmul.f32 1.442695, %v1317_v39 }
 0x6e9   :  { %1618 = vpow2.f32 %v1320_v40 }
 0x6f2   :  { %v1617_v41 = vpop.eup %1616 }
 0x6f3   :  { %v1374_v42 = vadd.f32 -1.0, %v1617_v41 }
 0x6f5   :  { %v1324_v18 = vsel %vm1314_vm4, %v1312_v35, %v1374_v42 }
 0x6f6   :  { %v1619_v19 = vpop.eup %1618  ;;  %1326 = vst.msk [vmem:[#allocation8] sm:$0xff] %vm106_vm1, %v1324_v18 }
 0x6f7   :  { %v1375_v43 = vadd.f32 -1.0, %v1619_v19 }
 0x6f9   :  { %v1325_v44 = vsel %vm1315_vm5, %v1313_v37, %v1375_v43 }
 0x6fa   :  { %1327 = vst.msk [vmem:[#allocation8 + $0x8] sm:$0xff] %vm106_vm1, %v1325_v44 }
 0x6fb   :  { %1691 = shalt.err (!%p1688_p5)
}
 0x6fc   :  { %s1718_s26 = smov 128   ;;  %s1719_s27 = smov 8  }
 0x6fd   :  { %1339 = dma.vmem_to_hbm [thread:$0]  %s1334_s25, 256, %s2007_s7, [#allocation4], %s1718_s26, %s1718_s26, %s1719_s27  }
 0x6fe   :  { %1704 = dma.done.wait [#allocation4], 256  }
 0x6ff   :  { %1705 = vsyncadd [#allocation4], 4294967040 }
 0x700   :  { %1343 = vsyncpa [#allocation3], 1 }
 0x701   :  { %1344 = vsyncpa [#allocation6], 1 }
 0x702   :  { %1345 = vsyncpa [#allocation4], 1 }

</bundles_post_ra>
